<compile_context>
chip_gen: v6e
topology: v6e:2x2x1
jax: 0.10.0
libtpu: 0.0.40
codegen_flags: <defaults>
</compile_context>

<pallas_src>
import jax
import jax.numpy as jnp
from jax.experimental import pallas as pl
from jax.experimental.pallas import tpu as pltpu

H1, H2, OUT = 64, 32, 1

_ALIGN = 16                                # row alignment (covers f32 and bf16 sublane tiles)
_TARGET_X_BLOCK_BYTES = 4 * 1024 * 1024    # ~4 MiB x tile per grid step
_VMEM_BUDGET_BYTES = 16 * 1024 * 1024      # per-step live-VMEM target (safe on v5e/v6e/v7x)
_VMEM_LIMIT_BYTES = 32 * 1024 * 1024       # explicit scoped-VMEM limit


def _round_up(x, m):
    return ((x + m - 1) // m) * m


def _cdiv(a, b):
    return (a + b - 1) // b


def _classifier_kernel(x_ref, w1_ref, b1_ref, w2_ref, b2_ref, w3_ref, b3_ref, out_ref):
    x = x_ref[...]                                             # (bt, D), bf16 by default

    # fc1: Linear(D, 64) + ReLU  (bf16 x bf16 on the MXU, f32 accumulation)
    h = jnp.dot(x, w1_ref[...], preferred_element_type=jnp.float32) + b1_ref[...]
    h = jnp.maximum(h, 0.0)                                    # (bt, 64) f32

    # fc2: Linear(64, 32) + ReLU
    h = jnp.dot(h, w2_ref[...], preferred_element_type=jnp.float32) + b2_ref[...]
    h = jnp.maximum(h, 0.0)                                    # (bt, 32) f32

    # fc3: Linear(32, 1). Computed as w3_rows(8,32) contracted against h(bt,32) on
    # its feature axis (A @ B^T MXU path) so the result is lane-dense: z8[r, j] =
    # sum_k w3p[r, k] * h[j, k]. Only row 0 of w3p is real (rows 1..7 are zeros,
    # padding for sublane alignment).
    z8 = jax.lax.dot_general(w3_ref[...], h,
                             dimension_numbers=(((1,), (1,)), ((), ())),
                             preferred_element_type=jnp.float32)   # (8, bt)
    z = z8[0:1, :] + b3_ref[...]                               # (1, bt)

    # Sigmoid: exp + approximate reciprocal both go to the EUP slot.
    # exp(-z) may hit +inf for very negative logits; 1/(inf) saturates to 0 correctly.
    out_ref[...] = pl.reciprocal(1.0 + jnp.exp(-z), approx=True).astype(out_ref.dtype)


def classifier_forward(x, params, *, x_dtype=jnp.bfloat16, block_rows=None):
    """x: [B, input_dim] float -> [B, 1] float32 sigmoid probabilities."""
    w1, b1, w2, b2, w3, b3 = params
    B, D = x.shape
    assert w1.shape == (D, H1), "input_dim mismatch between x and fc1 weight"

    # ---- D-aware batch-tile sizing (>=2 grid steps, bounded per-step VMEM) ----
    elem = jnp.dtype(x_dtype).itemsize
    # per-row live VMEM: double-buffered x + f32 h1/h2 intermediates + z/out (+ slack)
    per_row_bytes = 2 * D * elem + 4 * (H1 + H2 + 16)
    bt_cap = min(_TARGET_X_BLOCK_BYTES // (D * elem),
                 _VMEM_BUDGET_BYTES // per_row_bytes)
    bt_cap = max(_ALIGN, (bt_cap // _ALIGN) * _ALIGN)
    if block_rows is not None:
        bt_cap = max(_ALIGN, _round_up(min(block_rows, bt_cap), _ALIGN))
    n_steps = max(2, _cdiv(B, bt_cap))              # >=2 so both v7x TCs get work
    bt = max(_ALIGN, _round_up(_cdiv(B, n_steps), _ALIGN))
    b_pad = n_steps * bt
    grid = (n_steps,)

    # ---- operand preparation (wrapper-side; cheap / one-time) ----
    # Stream x (and W1) in bf16: x dominates HBM bytes, MXU takes bf16 natively.
    x = x.astype(x_dtype)
    if b_pad != B:
        # Padded tail rows are zeros; they flow through the net (producing
        # sigmoid-of-bias values) and are sliced off below. Harmless by design.
        x = jnp.pad(x, ((0, b_pad - B), (0, 0)))
    w1c = w1.astype(x_dtype)
    # fc3 weight as a lane-dense row, zero-padded to 8 sublanes for alignment.
    w3_row = w3.reshape(1, H2).astype(jnp.float32)
    w3p = jnp.pad(w3_row, ((0, 7), (0, 0)))

    def const2d(shape):  # grid-invariant operand: stays resident in VMEM (single DMA)
        return pl.BlockSpec(shape, lambda i: (0, 0))

    out3 = pl.pallas_call(
        _classifier_kernel,
        out_shape=jax.ShapeDtypeStruct((n_steps, 1, bt), jnp.float32),
        grid_spec=pltpu.PrefetchScalarGridSpec(
            num_scalar_prefetch=0,
            grid=grid,
            in_specs=[
                pl.BlockSpec((bt, D), lambda i: (i, 0)),   # x  (per batch tile)
                const2d((D, H1)),  const2d((1, H1)),       # W1 (bf16), b1
                const2d((H1, H2)), const2d((1, H2)),       # W2, b2
                const2d((8, H2)),  const2d((1, OUT)),      # W3 (row, padded to 8), b3
            ],
            # Lane-dense output: each step writes one full (1, bt) row.
            out_specs=pl.BlockSpec((None, 1, bt), lambda i: (i, 0, 0)),
        ),
        compiler_params=pltpu.CompilerParams(
            dimension_semantics=("parallel",),             # shard batch tiles across TCs (v7x)
            vmem_limit_bytes=_VMEM_LIMIT_BYTES,            # v5e default (16 MiB) is too small
        ),
    )(x, w1c, b1, w2, b2, w3p, b3)

    return out3.reshape(b_pad, 1)[:B]


def init_params(key, input_dim):
    """Deterministic init mimicking nn.Linear default (uniform(+/- 1/sqrt(fan_in)))."""
    def linear(k, fan_in, fan_out):
        kw, kb = jax.random.split(k)
        bound = 1.0 / jnp.sqrt(fan_in)
        w = jax.random.uniform(kw, (fan_in, fan_out), jnp.float32, -bound, bound)
        b = jax.random.uniform(kb, (1, fan_out), jnp.float32, -bound, bound)
        return w, b

    k1, k2, k3 = jax.random.split(key, 3)
    w1, b1 = linear(k1, input_dim, H1)
    w2, b2 = linear(k2, H1, H2)
    w3, b3 = linear(k3, H2, OUT)
    return (w1, b1, w2, b2, w3, b3)


def reference_forward(x, params, x_dtype=jnp.float32):
    """Pure-JAX reference. x_dtype=bf16 mimics the kernel's streaming precision."""
    w1, b1, w2, b2, w3, b3 = params
    xf = x.astype(x_dtype).astype(jnp.float32)
    w1f = w1.astype(x_dtype).astype(jnp.float32)
    h = jnp.maximum(xf @ w1f + b1, 0.0)
    h = jnp.maximum(h @ w2 + b2, 0.0)
    z = h @ w3 + b3
    return jax.nn.sigmoid(z)


if __name__ == "__main__":
    key = jax.random.PRNGKey(0)
    kx, kp = jax.random.split(key)

    # Small demo: encoded-feature input_dim=32, batch=50 (non-multiple of the tile,
    # exercises padding + the 2-step grid path).
    input_dim = 32
    B = 50
    x = jax.random.normal(kx, (B, input_dim), jnp.float32)
    params = init_params(kp, input_dim)

    out = jax.block_until_ready(classifier_forward(x, params))
    ref = reference_forward(x, params, x_dtype=jnp.bfloat16)

    assert out.shape == (B, OUT)
    assert bool(jnp.all((out >= 0.0) & (out <= 1.0)))
    # Tolerance covers bf16 streaming of x/W1 and the approximate EUP reciprocal.
    assert bool(jnp.allclose(out, ref, atol=5e-3, rtol=0.0)), \
        float(jnp.max(jnp.abs(out - ref)))

    print("KERNEL_OK")
</pallas_src>

<mosaic_0001>
module attributes {stable_mosaic.version = 11 : i64} {
  func.func @_classifier_kernel(%arg0: i32, %arg1: memref<32x32xbf16, #tpu.memory_space<vmem>>, %arg2: memref<32x64xbf16, #tpu.memory_space<vmem>>, %arg3: memref<1x64xf32, #tpu.memory_space<vmem>>, %arg4: memref<64x32xf32, #tpu.memory_space<vmem>>, %arg5: memref<1x32xf32, #tpu.memory_space<vmem>>, %arg6: memref<8x32xf32, #tpu.memory_space<vmem>>, %arg7: memref<1x1xf32, #tpu.memory_space<vmem>>, %arg8: memref<1x1x32xf32, #tpu.memory_space<vmem>>) attributes {dimension_semantics = [#tpu.dimension_semantics<parallel>], iteration_bounds = array<i64: 2>, scalar_prefetch = 0 : i64, scratch_operands = 0 : i64, tpu.core_type = #tpu.core_type<tc>, window_params = [{transform_indices = @transform_0, window_bounds = array<i64: 32, 32>}, {pipeline_mode = #tpu.pipeline_mode<synchronous>, transform_indices = @transform_1, window_bounds = array<i64: 32, 64>}, {pipeline_mode = #tpu.pipeline_mode<synchronous>, transform_indices = @transform_2, window_bounds = array<i64: 1, 64>}, {pipeline_mode = #tpu.pipeline_mode<synchronous>, transform_indices = @transform_3, window_bounds = array<i64: 64, 32>}, {pipeline_mode = #tpu.pipeline_mode<synchronous>, transform_indices = @transform_4, window_bounds = array<i64: 1, 32>}, {pipeline_mode = #tpu.pipeline_mode<synchronous>, transform_indices = @transform_5, window_bounds = array<i64: 8, 32>}, {pipeline_mode = #tpu.pipeline_mode<synchronous>, transform_indices = @transform_6, window_bounds = array<i64: 1, 1>}, {transform_indices = @transform_7, window_bounds = array<i64: 1, 1, 32>}]} {
    %c0 = arith.constant 0 : index
    %c0_0 = arith.constant 0 : index
    %0 = vector.load %arg1[%c0, %c0_0] : memref<32x32xbf16, #tpu.memory_space<vmem>>, vector<32x32xbf16>
    %c0_1 = arith.constant 0 : index
    %c0_2 = arith.constant 0 : index
    %1 = vector.load %arg2[%c0_1, %c0_2] : memref<32x64xbf16, #tpu.memory_space<vmem>>, vector<32x64xbf16>
    %cst = arith.constant dense<0.000000e+00> : vector<32x64xf32>
    %2 = tpu.matmul %0, %1, %cst {dimension_numbers = #tpu.dot_dimension_numbers<[1], [0], [0], [1], [0, 0, 1, 1], [], []>} : vector<32x32xbf16>, vector<32x64xbf16>, vector<32x64xf32> -> vector<32x64xf32>
    %c0_3 = arith.constant 0 : index
    %c0_4 = arith.constant 0 : index
    %3 = vector.load %arg3[%c0_3, %c0_4] : memref<1x64xf32, #tpu.memory_space<vmem>>, vector<1x64xf32>
    %4 = vector.broadcast %3 : vector<1x64xf32> to vector<32x64xf32>
    %5 = arith.addf %2, %4 : vector<32x64xf32>
    %cst_5 = arith.constant 0.000000e+00 : f32
    %6 = vector.broadcast %cst_5 : f32 to vector<32x64xf32>
    %7 = arith.maximumf %5, %6 : vector<32x64xf32>
    %c0_6 = arith.constant 0 : index
    %c0_7 = arith.constant 0 : index
    %8 = vector.load %arg4[%c0_6, %c0_7] : memref<64x32xf32, #tpu.memory_space<vmem>>, vector<64x32xf32>
    %cst_8 = arith.constant dense<0.000000e+00> : vector<32x32xf32>
    %9 = tpu.matmul %7, %8, %cst_8 {dimension_numbers = #tpu.dot_dimension_numbers<[1], [0], [0], [1], [0, 0, 1, 1], [], []>} : vector<32x64xf32>, vector<64x32xf32>, vector<32x32xf32> -> vector<32x32xf32>
    %c0_9 = arith.constant 0 : index
    %c0_10 = arith.constant 0 : index
    %10 = vector.load %arg5[%c0_9, %c0_10] : memref<1x32xf32, #tpu.memory_space<vmem>>, vector<1x32xf32>
    %11 = vector.broadcast %10 : vector<1x32xf32> to vector<32x32xf32>
    %12 = arith.addf %9, %11 : vector<32x32xf32>
    %cst_11 = arith.constant 0.000000e+00 : f32
    %13 = vector.broadcast %cst_11 : f32 to vector<32x32xf32>
    %14 = arith.maximumf %12, %13 : vector<32x32xf32>
    %c0_12 = arith.constant 0 : index
    %c0_13 = arith.constant 0 : index
    %15 = vector.load %arg6[%c0_12, %c0_13] : memref<8x32xf32, #tpu.memory_space<vmem>>, vector<8x32xf32>
    %cst_14 = arith.constant dense<0.000000e+00> : vector<8x32xf32>
    %16 = tpu.matmul %15, %14, %cst_14 {dimension_numbers = #tpu.dot_dimension_numbers<[1], [1], [0], [0], [0, 0, 1, 0], [], []>} : vector<8x32xf32>, vector<32x32xf32>, vector<8x32xf32> -> vector<8x32xf32>
    %17 = vector.extract_strided_slice %16 {offsets = [0, 0], sizes = [1, 32], strides = [1, 1]} : vector<8x32xf32> to vector<1x32xf32>
    %c0_15 = arith.constant 0 : index
    %c0_16 = arith.constant 0 : index
    %18 = vector.load %arg7[%c0_15, %c0_16] : memref<1x1xf32, #tpu.memory_space<vmem>>, vector<1x1xf32>
    %19 = vector.broadcast %18 : vector<1x1xf32> to vector<1x32xf32>
    %20 = arith.addf %17, %19 : vector<1x32xf32>
    %cst_17 = arith.constant 0.000000e+00 : f32
    %21 = vector.broadcast %cst_17 : f32 to vector<1x32xf32>
    %22 = arith.subf %21, %20 : vector<1x32xf32>
    %23 = math.exp %22 : vector<1x32xf32>
    %cst_18 = arith.constant 1.000000e+00 : f32
    %24 = vector.broadcast %cst_18 : f32 to vector<1x32xf32>
    %25 = arith.addf %24, %23 : vector<1x32xf32>
    %26 = tpu.reciprocal %25 {approx = true} : vector<1x32xf32> -> vector<1x32xf32>
    %c0_19 = arith.constant 0 : index
    %c0_20 = arith.constant 0 : index
    %c0_21 = arith.constant 0 : index
    %27 = vector.load %arg8[%c0_19, %c0_20, %c0_21] : memref<1x1x32xf32, #tpu.memory_space<vmem>>, vector<1x1x32xf32>
    %28 = vector.shape_cast %27 : vector<1x1x32xf32> to vector<1x32xf32>
    %29 = vector.shape_cast %26 : vector<1x32xf32> to vector<1x1x32xf32>
    tpu.vector_store %arg8[%c0_19, %c0_20, %c0_21], %29 {strides = array<i32>} : memref<1x1x32xf32, #tpu.memory_space<vmem>>, vector<1x1x32xf32>,
    return
  }
  func.func @transform_0(%arg0: i32) -> (i32, i32) {
    %c0_i32 = arith.constant 0 : i32
    %c0_i32_0 = arith.constant 0 : i32
    return %arg0, %c0_i32 : i32, i32
  }
  func.func @transform_1(%arg0: i32) -> (i32, i32) {
    %c0_i32 = arith.constant 0 : i32
    %c0_i32_0 = arith.constant 0 : i32
    %c0_i32_1 = arith.constant 0 : i32
    return %c0_i32, %c0_i32_0 : i32, i32
  }
  func.func @transform_2(%arg0: i32) -> (i32, i32) {
    %c0_i32 = arith.constant 0 : i32
    %c0_i32_0 = arith.constant 0 : i32
    %c0_i32_1 = arith.constant 0 : i32
    return %c0_i32, %c0_i32_0 : i32, i32
  }
  func.func @transform_3(%arg0: i32) -> (i32, i32) {
    %c0_i32 = arith.constant 0 : i32
    %c0_i32_0 = arith.constant 0 : i32
    %c0_i32_1 = arith.constant 0 : i32
    return %c0_i32, %c0_i32_0 : i32, i32
  }
  func.func @transform_4(%arg0: i32) -> (i32, i32) {
    %c0_i32 = arith.constant 0 : i32
    %c0_i32_0 = arith.constant 0 : i32
    %c0_i32_1 = arith.constant 0 : i32
    return %c0_i32, %c0_i32_0 : i32, i32
  }
  func.func @transform_5(%arg0: i32) -> (i32, i32) {
    %c0_i32 = arith.constant 0 : i32
    %c0_i32_0 = arith.constant 0 : i32
    %c0_i32_1 = arith.constant 0 : i32
    return %c0_i32, %c0_i32_0 : i32, i32
  }
  func.func @transform_6(%arg0: i32) -> (i32, i32) {
    %c0_i32 = arith.constant 0 : i32
    %c0_i32_0 = arith.constant 0 : i32
    %c0_i32_1 = arith.constant 0 : i32
    return %c0_i32, %c0_i32_0 : i32, i32
  }
  func.func @transform_7(%arg0: i32) -> (i32, i32, i32) {
    %c0_i32 = arith.constant 0 : i32
    %c0_i32_0 = arith.constant 0 : i32
    %c0_i32_1 = arith.constant 0 : i32
    return %arg0, %c0_i32, %c0_i32_0 : i32, i32, i32
  }
}

</mosaic_0001>

<bundles_post_ra>
// kernel: tpu_custom_call.1
= control target key start
LH: loop header
LB: loop body
LE: loop exit
PB: predicated region body
PF: predicated region fallthrough
CT: control target
= control target key end

     0   :  { %s1053_s0 = inlined_call_operand.vmem [shape: bf16[64,32], index: 0, kind: input, shape index: {}]   ;;  %s1054_s1 = inlined_call_operand.vmem [shape: bf16[32,64], index: 1, kind: input, shape index: {}]   ;;  %s1055_s2 = inlined_call_operand.vmem [shape: f32[1,64], index: 2, kind: input, shape index: {}]   ;;  %s1056_s3 = inlined_call_operand.vmem [shape: f32[64,32], index: 3, kind: input, shape index: {}]   ;;  %s1057_s4 = inlined_call_operand.vmem [shape: f32[1,32], index: 4, kind: input, shape index: {}]   ;;  %s1058_s5 = inlined_call_operand.vmem [shape: f32[8,32], index: 5, kind: input, shape index: {}]   ;;  %s1059_s6 = inlined_call_operand.<no memory space> [shape: f32[1,1], index: 6, kind: input, shape index: {}]   ;;  %s1060_s7 = inlined_call_operand.hbm [shape: f32[2,1,32], index: 7, kind: output, shape index: {}]  }
   0x1   :  { %v12_v0 = vstv %s1059_s6 }
   0x2   :  { %13 = vst [vmem:[#allocation2] sm:$0x1] %v12_v0 }
   0x3   :  { %14 = vsyncpa [#allocation4], 0 }
   0x4   :  { %16 = vsyncpa [#allocation4 + $0x1], 0  ;;  %s915_s26 = smov 0   ;;  %s917_s27 = smov 0  }
   0x5   :  { %s919_s28 = smov 0   ;;  %s921_s29 = smov 0  }
   0x6 LB: > { %s936_s6 = sadd.s32 4294967295, %s866_s29   ;;  %s667_s30 = sadd.s32 4294967294, %s866_s29   ;;  %s866_s29 = sphi %s921_s29, %s1066_s29   ;;  %s862_s28 = sphi %s919_s28, %s1065_s28   ;;  %s858_s27 = sphi %s917_s27, %s1064_s27   ;;  %s854_s26 = sphi %s915_s26, %s1063_s26  }
   0x7   : > { %s940_s8 = sadd.s32 1, %s866_s29   ;;  %s181_s9 = sadd.s32 1, %s862_s28 }
   0x8   : > { %s178_s10 = ssub.s32 %s866_s29, %s940_s8  ;;  %p191_p0 = scmp.ne.s32.totalorder %s862_s28, %s858_s27 }
   0x9   : > { %p179_p1 = scmp.eq.s32.totalorder %s178_s10, 0  ;;  %p192_p2 = scmp.eq.s32.totalorder %s936_s6, 1 }
   0xa   : > { %p197_p3 = scmp.ne.s32.totalorder %s858_s27, %s854_s26  ;;  %p198_p4 = scmp.eq.s32.totalorder %s667_s30, 1 }
   0xb   : > { %s951_s11 = scalar_select %p179_p1, %s862_s28, %s181_s9  }
   0xc   : > { %p953_p5 = por %p192_p2, %p191_p0  ;;  %p957_p6 = por %p198_p4, %p197_p3 }
   0xd   : > { %p670_p7 = scmp.ge.s32.totalorder %s866_s29, 1  ;;  %p243_p8 = scmp.lt.s32.totalorder %s866_s29, 3 }
   0xf   : > { %p244_p9 = pnand %p670_p7, %p243_p8 }
  0x10   : > { %s671_s16 = sshll.u32 (!%p244_p9), %s936_s6, 2  ;;  %s272_s15 = sand.u32 (!%p244_p9), 1, %s858_s27  }
  0x11   : > { %247 = sbr.rel (%p244_p9) target bundleno = 692 (0x2b4), region = 48  ;;  %p275_p10 = scmp.lt.s32.totalorder (!%p244_p9), %s671_s16, 7 }
  0x12   : > { %s273_s17 = scalar_lea.vmem (!%p244_p9), [#allocation3], %s272_s15  ;;  %s600_s22 = scalar_lea.sflag (!%p244_p9), [#allocation4], %s272_s15 }
  0x13   : > { %s612_s18 = sshll.u32 (!%p244_p9), %s273_s17, 4  ;;  %s871_s24 = smov (!%p244_p9), [#allocation3]   ;;  %s613_s18 = int_to_ptr.vmem [resolvable:$true] %s612_s18 }
  0x14   : > { %s806_s23 = scalar_lea.vmem (!%p244_p9), %s613_s18, 16 }
  0x15   : > { %p807_p11 = scmp.ne.s32.totalorder (!%p244_p9), %s613_s18, %s806_s23 }
  0x16   : > { %v798_v1 = vld [vmem:[%s1054_s1 + $0x8] sm:$0xff]   ;;  %v799_v2 = vld [vmem:[%s1054_s1] sm:$0xff]   ;;  %v385_v3 = vld [vmem:[%s1056_s3 + $0x38] sm:$0xff]  ;;  %s1068_s16 = smov (!%p275_p10, %s671_s16), 7  ;;  %vm318_vm0 = vcmask 261120   ;;  %vm393_vm1 = vcmask 523264   ;;  %v587_v43 = vlaneseq }
  0x17   : > { %714 = vmatprep.subr.bf16.mxu0 %v798_v1  ;;  %v384_v4 = vld [vmem:[%s1056_s3 + $0x30] sm:$0xff]  ;;  %722 = vmatprep.subr.mxu1 %v385_v3  ;;  %v383_v5 = vld [vmem:[%s1056_s3 + $0x28] sm:$0xff]  ;;  %s672_s25 = sshll.u32 %s1068_s16, 2  ;;  %v382_v8 = vld [vmem:[%s1056_s3 + $0x20] sm:$0xff]  ;;  %v868_v26 = vmov 0.0   ;;  %vm869_vm2 = vmmov 0   ;;  %p808_p12 = pnand %p807_p11, %p953_p5 }
  0x18   : > { %715 = vmatpush3.bf16.msra.mxu0 %v798_v1  ;;  %723 = vmatpush3.msra.mxu1 %v385_v3  ;;  %s278_s10 = scalar_lea.vmem %s1053_s0, %s672_s25  ;;  %v381_v9 = vld [vmem:[%s1056_s3 + $0x18] sm:$0xff]  ;;  %v380_v10 = vld [vmem:[%s1056_s3 + $0x10] sm:$0xff]  ;;  %v379_v11 = vld [vmem:[%s1056_s3 + $0x8] sm:$0xff]  ;;  %v870_v28 = vmov 0   ;;  %v588_v44 = vshrl.u32 %v587_v43, 7  ;;  %s690_s16 = sshll.u32 %s936_s6, 4 }
  0x19   : > { %716 = vmatprep.subr.bf16.mxu0 %v799_v2  ;;  %724 = vmatprep.subr.mxu1 %v384_v4  ;;  %v800_v6 = vld [vmem:[%s278_s10] sm:$0xff]   ;;  %v801_v7 = vld [vmem:[%s278_s10 + $0x8] sm:$0xff]   ;;  %vm597_vm3 = vcmask 253952   ;;  %s1018_s21 = scalar_lea.hbm %s1060_s7, %s690_s16  ;;  %p809_p13 = pneg %p808_p12 }
  0x1a   : > { %725 = vmatpush3.msra.mxu1 %v384_v4  ;;  %718 = vmatprep.mubr.msk.bf16.mxu0 %vm318_vm0, %v800_v6  ;;  %v378_v12 = vld [vmem:[%s1056_s3] sm:$0xff]  ;;  %v589_v45 = vsub.s32 0, %v588_v44  ;;  %s810_s25 = sshll.u32 %s871_s24, 4  ;;  %s811_s25 = int_to_ptr.vmem [resolvable:$false] %s810_s25 }
  0x1b   : > { %726 = vmatprep.subr.mxu1 %v383_v5  ;;  %v673_v14 = vld [vmem:[%s1055_s2] ss:$0 sm:$0xff]  ;;  %797 = vset.pattern.permute.xlu0 %v870_v28  ;;  %s812_s6 = scalar_lea.vmem %s811_s25, 32  ;;  %p813_p0 = scmp.lt.s32.totalorder %s613_s18, %s811_s25 }
  0x1c   : > { %717 = vmatpush3.bf16.msra.mxu0 %v799_v2  ;;  %727 = vmatpush3.msra.mxu1 %v383_v5  ;;  %v581_v27 = vld [vmem:[#allocation2] sm:$0x1]  ;;  %p814_p1 = scmp.lt.s32.totalorder %s812_s6, %s806_s23 }
  0x1d   : > { %728 = vmatprep.subr.mxu1 %v382_v8  ;;  %744 = vmatprep.subr.mxu0 %v868_v26  ;;  %v680_v31 = vld [vmem:[%s1057_s4] ss:$0 sm:$0xff] }
  0x1e   : > { %729 = vmatpush3.msra.mxu1 %v382_v8  ;;  %584 = vperm.xlu0 %797, %v581_v27   ;;  %v495_v42 = vld [vmem:[%s1058_s5] sm:$0xff]  ;;  %p815_p2 = por %p814_p1, %p813_p0 }
  0x1f   : > { %719 = vmatmul.mubr.msk.bf16.vlgmr.msra.gmra.mxu0 %vm318_vm0, %v801_v7  ;;  %730 = vmatprep.subr.mxu1 %v381_v9 }
  0x20   : > { %731 = vmatpush3.msra.mxu1 %v381_v9  ;;  %752 = vmatprep.mubr.msk.f32.mxu0 %vm869_vm2, %v868_v26  ;;  %p816_p3 = pnand %p815_p2, %p809_p13 }
  0x21   : > { %732 = vmatprep.subr.mxu1 %v380_v10 }
  0x22   : > { %733 = vmatpush3.msra.mxu1 %v380_v10 }
  0x23   : > { %734 = vmatprep.subr.mxu1 %v379_v11 }
  0x24   : > { %735 = vmatpush3.msra.mxu1 %v379_v11 }
  0x25   : > { %736 = vmatprep.subr.mxu1 %v378_v12 }
  0x26   : > { %737 = vmatpush3.msra.mxu1 %v378_v12 }
  0x99   : > { %v585_v46 = vpop.permute.xlu0 %584 }
  0x9a   : > { %v590_v47 = vrot.slane %v585_v46, %v589_v45 }
  0xdf   : > { %v720_v13 = vpop.f32.mrf.mxu0 }
  0xe0   : > { %v368_v19 = vadd.f32 %v720_v13, %v673_v14 }
  0xe1   : > { %v359_v15 = vpop.f32.mrf.mxu0 }
  0xe2   : > { %v360_v16 = vadd.f32 %v673_v14, %v359_v15  ;;  %v376_v24 = vmax.f32 %v368_v19, 0.0 }
  0xe3   : > { %v721_v17 = vpop.f32.mrf.mxu0 }
  0xe4   : > { %v374_v18 = vmax.f32 %v360_v16, 0.0  ;;  %v371_v22 = vadd.f32 %v721_v17, %v673_v14 }
  0xe5   : > { %v362_v20 = vpop.f32.mrf.mxu0 }
  0xe6   : > { %v363_v21 = vadd.f32 %v673_v14, %v362_v20  ;;  %738 = vmatprep.mubr.msk.f32.mxu1 %vm393_vm1, %v374_v18  ;;  %v377_v25 = vmax.f32 %v371_v22, 0.0 }
  0xe8   : > { %v375_v23 = vmax.f32 %v363_v21, 0.0 }
  0xea   : > { %739 = vmatmul.mubr.msk.f32.vlgmr.msra.gmra.mxu1 %vm393_vm1, %v375_v23 }
  0xeb   : > { %741 = vmatprep.mubr.msk.f32.mxu1 %vm393_vm1, %v376_v24 }
  0xee   : > { %742 = vmatmul.mubr.msk.f32.gmra.mxu1 %vm393_vm1, %v377_v25 }
 0x1aa   : > { %v740_v29 = vpop.f32.mrf.mxu1 }
 0x1ab   : > { %v478_v37 = vadd.f32 %v740_v29, %v680_v31 }
 0x1ac   : > { %v472_v30 = vpop.f32.mrf.mxu1 }
 0x1ad   : > { %v492_v39 = vmax.f32 %v478_v37, 0.0  ;;  %v473_v40 = vadd.f32 %v680_v31, %v472_v30 }
 0x1ae   : > { %v743_v32 = vpop.f32.mrf.mxu1 }
 0x1af   : > { %v488_v33 = vadd.f32 %v743_v32, %v680_v31  ;;  %v491_v41 = vmax.f32 %v473_v40, 0.0 }
 0x1b0   : > { %v482_v34 = vpop.f32.mrf.mxu1 }
 0x1b1   : > { %v494_v35 = vmax.f32 %v488_v33, 0.0  ;;  %v483_v36 = vadd.f32 %v680_v31, %v482_v34 }
 0x1b3   : > { %745 = vmatpush3.xpose.msk.msra.mxu0 %vm318_vm0, %v494_v35  ;;  %v493_v38 = vmax.f32 %v483_v36, 0.0 }
 0x1b4   : > { %746 = vmatprep.subr.mxu0 %v868_v26 }
 0x1b7   : > { %747 = vmatpush3.xpose.msk.msra.mxu0 %vm318_vm0, %v493_v38 }
 0x1b8   : > { %748 = vmatprep.subr.mxu0 %v868_v26 }
 0x1bb   : > { %749 = vmatpush3.xpose.msk.msra.mxu0 %vm318_vm0, %v492_v39 }
 0x1bc   : > { %750 = vmatprep.subr.mxu0 %v868_v26 }
 0x1bf   : > { %751 = vmatpush3.xpose.msk.msra.mxu0 %vm318_vm0, %v491_v41 }
 0x1c2   : > { %753 = vmatmul.mubr.msk.f32.vlgmr.msra.gmra.mxu0 %vm318_vm0, %v495_v42 }
 0x282   : > { %v577_v48 = vpop.f32.mrf.mxu0 }
 0x283   : > { %v591_v49 = vadd.f32 %v590_v47, %v577_v48 }
 0x284   : > { %v754_v50 = vpop.f32.mrf.mxu0 }
 0x285   : > { %v592_v51 = vsub.f32 0.0, %v591_v49 }
 0x287   : > { %v593_v52 = vmul.f32 1.442695, %v592_v51 }
 0x289   : > { %802 = vpow2.f32 %v593_v52 }
 0x296   : > { %v803_v53 = vpop.eup %802 }
 0x297   : > { %v595_v54 = vadd.f32 1.0, %v803_v53 }
 0x299   : > { %804 = vrcp.f32 %v595_v54 }
 0x2a6   : > { %v805_v55 = vpop.eup %804 }
 0x2a7   : > { %598 = vst.msk [vmem:[%s273_s17] sm:$0x1] %vm597_vm3, %v805_v55 }
 0x2a8   : > { %819 = shalt.err (!%p816_p3)
}
 0x2a9   : > { %s820_s30 = scalar_lea.hbm %s1018_s21, 16  ;;  %s824_s14 = scalar_lea.hbm %s1060_s7, 32 }
 0x2aa   : > { %p821_p4 = scmp.ne.s32.totalorder %s1018_s21, %s820_s30  ;;  %p825_p9 = scmp.lt.s32.totalorder %s1018_s21, %s1060_s7 }
 0x2ab   : > { %p826_p10 = scmp.lt.s32.totalorder %s824_s14, %s820_s30 }
 0x2ac   : > { %p822_p7 = pnand %p821_p4, %p953_p5 }
 0x2ad   : > { %p827_p11 = por %p826_p10, %p825_p9 }
 0x2ae   : > { %p823_p8 = pneg %p822_p7 }
 0x2b0   : > { %p828_p12 = pnand %p827_p11, %p823_p8 }
 0x2b2   : > { %831 = shalt.err (!%p828_p12)
}
 0x2b3   : > { %755 = dma.vmem_to_hbm [thread:$0]  (%p953_p5), %s613_s18, 16, %s1018_s21, %s600_s22  }
 0x2b4 PF: > { %p761_p13 = scmp.ge.s32.totalorder %s866_s29, 2  ;;  %s624_s17 = sand.u32 1, %s854_s26  }
 0x2b5   : > { %s625_s19 = scalar_lea.sflag [#allocation4], %s624_s17 }
 0x2b6   : > { %p758_p0 = pnand %p761_p13, %p957_p6 }
 0x2b8   : > { %p759_p1 = pneg %p758_p0 }
 0x2ba   : > { %849 = dma.done.wait (%p759_p1), %s625_s19, 16  }
 0x2bb   : > { %851 = vsyncadd (%p759_p1), %s625_s19, 4294967280  ;;  %p19_p2 = scmp.ge.s32.totalorder %s940_s8, 4   ;;  %s1063_s26 = smov %s858_s27 }
 0x2bc   : > { %s1064_s27 = smov %s862_s28  ;;  %s1065_s28 = smov %s951_s11 }
 0x2bd   : > { %s1066_s29 = smov %s940_s8  ;;  %21 = sbr.rel (!%p19_p2) target bundleno = 6 (0x6), region = 83 }
 0x2c2   :  { %629 = vsyncpa [#allocation4], 1 }
 0x2c3   :  { %631 = vsyncpa [#allocation4 + $0x1], 1 }

</bundles_post_ra>
